<compile_context>
chip_gen: v7x
topology: tpu7x:2x2x1
jax: 0.10.0
libtpu: 0.0.40
codegen_flags: <defaults>
</compile_context>

<pallas_src>
import functools
import math

import jax
import jax.numpy as jnp
from jax.experimental import pallas as pl
from jax.experimental.pallas import tpu as pltpu


_NEG_LOG_EPS = -math.log(1e-4)  # -log(clamp floor of the one-hot) ~= 9.2103


def _rce_kernel(pred_ref, lab_ref, rce_ref, *, neg_log_eps):
    # --- numerically stable softmax over classes (last / lane axis) ---
    x = pred_ref[...].astype(jnp.float32)                       # (tn, C)
    x = x - jnp.max(x, axis=1, keepdims=True)
    e = jnp.exp(x)
    inv = pl.reciprocal(jnp.sum(e, axis=1, keepdims=True), approx=False)  # (tn,1)
    p = jnp.clip(e * inv, 1e-7, 1.0)                            # (tn, C)

    # --- reverse cross entropy without materializing the one-hot/log ---
    # log(clamped one-hot) = 0 at the label column, log(1e-4) elsewhere, so
    #   rce = -log(1e-4) * (sum_j p_j - p_label)
    labels = lab_ref[...]                                       # (tn, 1) int32
    col = jax.lax.broadcasted_iota(jnp.int32, x.shape, 1)       # (tn, C)
    p_label = jnp.sum(jnp.where(col == labels, p, 0.0), axis=1, keepdims=True)
    total = jnp.sum(p, axis=1, keepdims=True)
    rce_ref[...] = neg_log_eps * (total - p_label)              # (tn, 1)


def _pick_tile_n(n, c, vmem_budget_bytes=8 << 20):
    """Largest row tile that divides N, is a multiple of 8 (or == N), and fits
    a conservative per-buffer VMEM budget (double-buffered pred + labels + out)."""
    bytes_per_row = (c + 2) * 4 * 2  # f32 pred + i32 label + f32 out, x2 buffers
    max_rows = max(8, vmem_budget_bytes // bytes_per_row)
    if n <= max_rows:
        return n  # single grid step: block shape == full array shape
    t = (max_rows // 8) * 8
    while t >= 8:
        if n % t == 0:
            return t
        t -= 8
    return n  # no valid multiple-of-8 divisor; fall back to one big block


def reverse_cross_entropy(pred, labels, num_classes, scale=1.0, *, tile_n=None):
    """pred: (N, C) float, labels: (N,) int -> scalar float32 loss."""
    N, C = pred.shape
    assert C == num_classes
    if tile_n is None:
        tile_n = _pick_tile_n(N, C)
    assert N % tile_n == 0, "batch must be divisible by the row tile"

    labels2d = labels.astype(jnp.int32).reshape(N, 1)
    kernel = functools.partial(_rce_kernel, neg_log_eps=_NEG_LOG_EPS)

    rce = pl.pallas_call(
        kernel,
        out_shape=jax.ShapeDtypeStruct((N, 1), jnp.float32),
        grid=(N // tile_n,),
        in_specs=[
            pl.BlockSpec((tile_n, C), lambda i: (i, 0)),
            pl.BlockSpec((tile_n, 1), lambda i: (i, 0)),
        ],
        out_specs=pl.BlockSpec((tile_n, 1), lambda i: (i, 0)),
        compiler_params=pltpu.CompilerParams(
            dimension_semantics=("parallel",),  # each step owns its output block
        ),
    )(pred, labels2d)

    return scale * jnp.mean(rce)


def _reference(pred, labels, num_classes, scale=1.0):
    p = jax.nn.softmax(pred.astype(jnp.float32), axis=1)
    p = jnp.clip(p, 1e-7, 1.0)
    oh = jax.nn.one_hot(labels, num_classes, dtype=jnp.float32)
    oh = jnp.clip(oh, 1e-4, 1.0)
    rce = -jnp.sum(p * jnp.log(oh), axis=1)
    return scale * jnp.mean(rce)


if __name__ == "__main__":
    key = jax.random.PRNGKey(0)
    k1, k2 = jax.random.split(key)

    N, C = 64, 16
    scale = 1.0

    pred = jax.random.normal(k1, (N, C), dtype=jnp.float32)
    labels = jax.random.randint(k2, (N,), 0, C, dtype=jnp.int32)

    loss = reverse_cross_entropy(pred, labels, num_classes=C, scale=scale)
    loss = jax.block_until_ready(loss)

    ref = _reference(pred, labels, C, scale)
    assert jnp.allclose(loss, ref, rtol=1e-5, atol=1e-5), (loss, ref)

    print("KERNEL_OK")
</pallas_src>

<mosaic_0001>
module attributes {stable_mosaic.version = 11 : i64} {
  func.func @_rce_kernel(%arg0: i32, %arg1: memref<64x16xf32, #tpu.memory_space<vmem>>, %arg2: memref<64x1xi32, #tpu.memory_space<vmem>>, %arg3: memref<64x1xf32, #tpu.memory_space<vmem>>) attributes {dimension_semantics = [#tpu.dimension_semantics<parallel>], iteration_bounds = array<i64: 1>, scalar_prefetch = 0 : i64, scratch_operands = 0 : i64, tpu.core_type = #tpu.core_type<tc>, window_params = [{transform_indices = @transform_0, window_bounds = array<i64: 64, 16>}, {transform_indices = @transform_1, window_bounds = array<i64: 64, 1>}, {transform_indices = @transform_2, window_bounds = array<i64: 64, 1>}]} {
    %c0 = arith.constant 0 : index
    %c0_0 = arith.constant 0 : index
    %0 = vector.load %arg1[%c0, %c0_0] : memref<64x16xf32, #tpu.memory_space<vmem>>, vector<64x16xf32>
    %cst = arith.constant dense<0xFF800000> : vector<64xf32>
    %1 = vector.multi_reduction <maximumf>, %0, %cst [1] : vector<64x16xf32> to vector<64xf32>
    %2 = vector.shape_cast %1 : vector<64xf32> to vector<64x1xf32>
    %3 = vector.broadcast %2 : vector<64x1xf32> to vector<64x16xf32>
    %4 = arith.subf %0, %3 : vector<64x16xf32>
    %5 = math.exp %4 : vector<64x16xf32>
    %cst_1 = arith.constant dense<0.000000e+00> : vector<64xf32>
    %6 = vector.multi_reduction <add>, %5, %cst_1 [1] : vector<64x16xf32> to vector<64xf32>
    %7 = vector.shape_cast %6 : vector<64xf32> to vector<64x1xf32>
    %8 = tpu.reciprocal %7 : vector<64x1xf32> -> vector<64x1xf32>
    %9 = vector.broadcast %8 : vector<64x1xf32> to vector<64x16xf32>
    %10 = arith.mulf %5, %9 : vector<64x16xf32>
    %cst_2 = arith.constant 1.000000e-07 : f32
    %cst_3 = arith.constant 1.000000e+00 : f32
    %11 = vector.broadcast %cst_2 : f32 to vector<64x16xf32>
    %12 = arith.maximumf %11, %10 : vector<64x16xf32>
    %13 = vector.broadcast %cst_3 : f32 to vector<64x16xf32>
    %14 = arith.minimumf %13, %12 : vector<64x16xf32>
    %c0_4 = arith.constant 0 : index
    %c0_5 = arith.constant 0 : index
    %15 = vector.load %arg2[%c0_4, %c0_5] : memref<64x1xi32, #tpu.memory_space<vmem>>, vector<64x1xi32>
    %16 = tpu.iota {dimensions = array<i32: 1>} : vector<64x16xi32>
    %17 = vector.broadcast %15 : vector<64x1xi32> to vector<64x16xi32>
    %18 = arith.cmpi eq, %16, %17 : vector<64x16xi32>
    %cst_6 = arith.constant 0.000000e+00 : f32
    %19 = vector.broadcast %cst_6 : f32 to vector<64x16xf32>
    %20 = arith.select %18, %14, %19 : vector<64x16xi1>, vector<64x16xf32>
    %cst_7 = arith.constant dense<0.000000e+00> : vector<64xf32>
    %21 = vector.multi_reduction <add>, %20, %cst_7 [1] : vector<64x16xf32> to vector<64xf32>
    %22 = vector.shape_cast %21 : vector<64xf32> to vector<64x1xf32>
    %cst_8 = arith.constant dense<0.000000e+00> : vector<64xf32>
    %23 = vector.multi_reduction <add>, %14, %cst_8 [1] : vector<64x16xf32> to vector<64xf32>
    %24 = vector.shape_cast %23 : vector<64xf32> to vector<64x1xf32>
    %25 = arith.subf %24, %22 : vector<64x1xf32>
    %cst_9 = arith.constant 9.21034049 : f32
    %26 = vector.broadcast %cst_9 : f32 to vector<64x1xf32>
    %27 = arith.mulf %26, %25 : vector<64x1xf32>
    %c0_10 = arith.constant 0 : index
    %c0_11 = arith.constant 0 : index
    %28 = vector.load %arg3[%c0_10, %c0_11] : memref<64x1xf32, #tpu.memory_space<vmem>>, vector<64x1xf32>
    tpu.vector_store %arg3[%c0_10, %c0_11], %27 {strides = array<i32>} : memref<64x1xf32, #tpu.memory_space<vmem>>, vector<64x1xf32>,
    return
  }
  func.func @transform_0(%arg0: i32) -> (i32, i32) {
    %c0_i32 = arith.constant 0 : i32
    %c0_i32_0 = arith.constant 0 : i32
    return %arg0, %c0_i32 : i32, i32
  }
  func.func @transform_1(%arg0: i32) -> (i32, i32) {
    %c0_i32 = arith.constant 0 : i32
    %c0_i32_0 = arith.constant 0 : i32
    return %arg0, %c0_i32 : i32, i32
  }
  func.func @transform_2(%arg0: i32) -> (i32, i32) {
    %c0_i32 = arith.constant 0 : i32
    %c0_i32_0 = arith.constant 0 : i32
    return %arg0, %c0_i32 : i32, i32
  }
}

</mosaic_0001>

<bundles_post_ra>
// kernel: tpu_custom_call.1
= control target key start
LH: loop header
LB: loop body
LE: loop exit
PB: predicated region body
PF: predicated region fallthrough
CT: control target
= control target key end

     0   :  { %vm19_vm0 = vcmask 130048   ;;  %v286_v16 = vmov 0   ;;  %vm238_vm9 = vcmask 7168   ;;  %s452_s0 = inlined_call_operand.vmem [shape: f32[64,16], index: 0, kind: input, shape index: {}]   ;;  %s453_s1 = inlined_call_operand.vmem [shape: s32[64,1], index: 1, kind: input, shape index: {}]   ;;  %s454_s2 = inlined_call_operand.vmem [shape: f32[64,1], index: 2, kind: output, shape index: {}]  }
   0x1   :  { %v11_v0 = vld [vmem:[%s452_s0] sm:$0xff]  ;;  %v13_v1 = vld [vmem:[%s452_s0 + $0x10] sm:$0xff]  ;;  %v12_v2 = vld [vmem:[%s452_s0 + $0x8] sm:$0xff]  ;;  %253 = vset.pattern.permute.xlu1 %v286_v16  ;;  %252 = vset.pattern.permute.xlu0 %v286_v16 }
   0x2   :  { %v20_v3 = vsel %vm19_vm0, %v11_v0, -inf  ;;  %v26_v4 = vsel %vm19_vm0, %v13_v1, -inf  ;;  %v14_v5 = vld [vmem:[%s452_s0 + $0x18] sm:$0xff]  ;;  %v23_v6 = vsel %vm19_vm0, %v12_v2, -inf  ;;  %v15_v8 = vld [vmem:[%s452_s0 + $0x20] sm:$0xff]  ;;  %v16_v9 = vld [vmem:[%s452_s0 + $0x28] sm:$0xff] }
   0x3   :  { %21 = vmax.xlane.f32.xlu0 %v20_v3  ;;  %27 = vmax.xlane.f32.xlu1 %v26_v4  ;;  %v29_v7 = vsel %vm19_vm0, %v14_v5, -inf  ;;  %v32_v10 = vsel %vm19_vm0, %v15_v8, -inf  ;;  %v35_v11 = vsel %vm19_vm0, %v16_v9, -inf  ;;  %v17_v12 = vld [vmem:[%s452_s0 + $0x30] sm:$0xff]  ;;  %v332_v13 = vld [vmem:[%s452_s0 + $0x38] sm:$0xff]  ;;  %v125_v52 = vld [vmem:[%s453_s1 + $0x8] sm:$0xff] }
   0x4   :  { %v38_v14 = vsel %vm19_vm0, %v17_v12, -inf  ;;  %v41_v15 = vsel %vm19_vm0, %v332_v13, -inf  ;;  %v126_v53 = vld [vmem:[%s453_s1 + $0x10] sm:$0xff]  ;;  %v124_v54 = vld [vmem:[%s453_s1] sm:$0xff]  ;;  %v127_v55 = vld [vmem:[%s453_s1 + $0x18] sm:$0xff] }
   0x5   :  { %v128_v56 = vld [vmem:[%s453_s1 + $0x20] sm:$0xff]  ;;  %v129_v57 = vld [vmem:[%s453_s1 + $0x28] sm:$0xff]  ;;  %v130_v58 = vld [vmem:[%s453_s1 + $0x30] sm:$0xff] }
   0x7   :  { %24 = vmax.xlane.f32.xlu0 %v23_v6  ;;  %30 = vmax.xlane.f32.xlu1 %v29_v7 }
   0xb   :  { %33 = vmax.xlane.f32.xlu0 %v32_v10  ;;  %36 = vmax.xlane.f32.xlu1 %v35_v11 }
   0xf   :  { %39 = vmax.xlane.f32.xlu0 %v38_v14  ;;  %42 = vmax.xlane.f32.xlu1 %v41_v15 }
  0x90   :  { %v22_v17 = vpop.xlane.xlu0 %21  ;;  %v28_v18 = vpop.xlane.xlu1 %27 }
  0x91   :  { %v44_v19 = vsub.f32 %v11_v0, %v22_v17  ;;  %v46_v20 = vsub.f32 %v13_v1, %v28_v18  ;;  %v131_v0 = vld [vmem:[%s453_s1 + $0x38] sm:$0xff] }
  0x93   :  { %v52_v21 = vmul.f32 1.442695, %v44_v19  ;;  %v56_v22 = vmul.f32 1.442695, %v46_v20  ;;  %v132_v20 = vlaneseq }
  0x94   :  { %v25_v23 = vpop.xlane.xlu0 %24  ;;  %v31_v24 = vpop.xlane.xlu1 %30 }
  0x95   :  { %254 = vpow2.f32 %v52_v21  ;;  %v45_v25 = vsub.f32 %v12_v2, %v25_v23  ;;  %v47_v26 = vsub.f32 %v14_v5, %v31_v24 }
  0x96   :  { %256 = vpow2.f32 %v56_v22 }
  0x97   :  { %v54_v27 = vmul.f32 1.442695, %v45_v25  ;;  %v58_v28 = vmul.f32 1.442695, %v47_v26 }
  0x98   :  { %v34_v29 = vpop.xlane.xlu0 %33  ;;  %v37_v30 = vpop.xlane.xlu1 %36 }
  0x99   :  { %258 = vpow2.f32 %v54_v27  ;;  %v48_v31 = vsub.f32 %v15_v8, %v34_v29  ;;  %v49_v32 = vsub.f32 %v16_v9, %v37_v30 }
  0x9a   :  { %260 = vpow2.f32 %v58_v28 }
  0x9b   :  { %v60_v33 = vmul.f32 1.442695, %v48_v31  ;;  %v62_v34 = vmul.f32 1.442695, %v49_v32  ;;  %v393_v31 = vand.u32 127, %v132_v20 }
  0x9c   :  { %v40_v35 = vpop.xlane.xlu0 %39  ;;  %v43_v59 = vpop.xlane.xlu1 %42 }
  0x9d   :  { %262 = vpow2.f32 %v60_v33  ;;  %v50_v36 = vsub.f32 %v17_v12, %v40_v35  ;;  %v51_v60 = vsub.f32 %v332_v13, %v43_v59 }
  0x9e   :  { %264 = vpow2.f32 %v62_v34 }
  0x9f   :  { %v255_v37 = vpop.eup %254  ;;  %v64_v38 = vmul.f32 1.442695, %v50_v36  ;;  %v66_v61 = vmul.f32 1.442695, %v51_v60 }
  0xa0   :  { %v337_v39 = vpop.eup %256  ;;  %v68_v40 = vsel %vm19_vm0, %v255_v37, 0.0 }
  0xa1   :  { %266 = vpow2.f32 %v64_v38  ;;  %69 = vadd.xlane.f32.xlu0 %v68_v40  ;;  %v74_v41 = vsel %vm19_vm0, %v337_v39, 0.0 }
  0xa2   :  { %268 = vpow2.f32 %v66_v61 }
  0xa3   :  { %v259_v42 = vpop.eup %258 }
  0xa4   :  { %v342_v43 = vpop.eup %260  ;;  %v71_v44 = vsel %vm19_vm0, %v259_v42, 0.0 }
  0xa5   :  { %75 = vadd.xlane.f32.xlu0 %v74_v41  ;;  %72 = vadd.xlane.f32.xlu1 %v71_v44  ;;  %v77_v45 = vsel %vm19_vm0, %v342_v43, 0.0 }
  0xa7   :  { %v347_v46 = vpop.eup %262 }
  0xa8   :  { %v349_v47 = vpop.eup %264  ;;  %v80_v48 = vsel %vm19_vm0, %v347_v46, 0.0 }
  0xa9   :  { %78 = vadd.xlane.f32.xlu1 %v77_v45  ;;  %81 = vadd.xlane.f32.xlu0 %v80_v48  ;;  %v83_v49 = vsel %vm19_vm0, %v349_v47, 0.0 }
  0xab   :  { %v355_v50 = vpop.eup %266 }
  0xac   :  { %v86_v51 = vsel %vm19_vm0, %v355_v50, 0.0  ;;  %v381_v62 = vpop.eup %268 }
  0xad   :  { %84 = vadd.xlane.f32.xlu1 %v83_v49  ;;  %87 = vadd.xlane.f32.xlu0 %v86_v51  ;;  %v89_v63 = vsel %vm19_vm0, %v381_v62, 0.0 }
  0xbe   :  { %138 = vperm.xlu1 %253, %v125_v52  }
  0xc2   :  { %141 = vperm.xlu1 %253, %v126_v53  }
  0xc3   :  { %135 = vperm.xlu0 %252, %v124_v54  }
  0xc6   :  { %144 = vperm.xlu1 %253, %v127_v55  }
  0xca   :  { %147 = vperm.xlu1 %253, %v128_v56  }
  0xce   :  { %150 = vperm.xlu1 %253, %v129_v57  }
  0xd2   :  { %153 = vperm.xlu1 %253, %v130_v58  }
  0xf6   :  { %90 = vadd.xlane.f32.xlu1 %v89_v63 }
 0x107   :  { %156 = vperm.xlu1 %253, %v131_v0  }
 0x12e   :  { %v70_v1 = vpop.xlane.xlu0 %69 }
 0x12f   :  { %270 = vrcp.f32 %v70_v1 }
 0x132   :  { %v73_v2 = vpop.xlane.xlu1 %72  ;;  %v76_v3 = vpop.xlane.xlu0 %75 }
 0x133   :  { %272 = vrcp.f32 %v73_v2 }
 0x134   :  { %274 = vrcp.f32 %v76_v3 }
 0x136   :  { %v79_v4 = vpop.xlane.xlu1 %78  ;;  %v82_v5 = vpop.xlane.xlu0 %81 }
 0x137   :  { %276 = vrcp.f32 %v79_v4 }
 0x138   :  { %278 = vrcp.f32 %v82_v5 }
 0x139   :  { %v271_v6 = vpop.eup %270 }
 0x13a   :  { %v85_v7 = vpop.xlane.xlu1 %84  ;;  %v100_v8 = vmul.f32 %v271_v6, %v255_v37  ;;  %v88_v9 = vpop.xlane.xlu0 %87 }
 0x13b   :  { %280 = vrcp.f32 %v85_v7 }
 0x13c   :  { %v108_v10 = vmax.f32 %v100_v8, 1e-07  ;;  %282 = vrcp.f32 %v88_v9 }
 0x13d   :  { %v273_v11 = vpop.eup %272 }
 0x13e   :  { %v275_v12 = vpop.eup %274  ;;  %v139_v13 = vpop.permute.xlu1 %138  ;;  %v116_v14 = vmin.f32 %v108_v10, 1.0  ;;  %v101_v15 = vmul.f32 %v273_v11, %v259_v42 }
 0x13f   :  { %v102_v16 = vmul.f32 %v275_v12, %v337_v39  ;;  %vm159_vm1 = vcmp.eq.s32.totalorder %v393_v31, %v139_v13 }
 0x140   :  { %v198_v17 = vsel %vm19_vm0, %v116_v14, 0.0  ;;  %v109_v18 = vmax.f32 %v101_v15, 1e-07 }
 0x141   :  { %v277_v19 = vpop.eup %276  ;;  %199 = vadd.xlane.f32.xlu0 %v198_v17  ;;  %v110_v21 = vmax.f32 %v102_v16, 1e-07 }
 0x142   :  { %v279_v22 = vpop.eup %278  ;;  %v142_v23 = vpop.permute.xlu1 %141  ;;  %v117_v24 = vmin.f32 %v109_v18, 1.0  ;;  %v103_v25 = vmul.f32 %v277_v19, %v342_v43 }
 0x143   :  { %v118_v26 = vmin.f32 %v110_v21, 1.0  ;;  %v104_v27 = vmul.f32 %v279_v22, %v347_v46  ;;  %v136_v37 = vpop.permute.xlu0 %135  ;;  %vm160_vm3 = vcmp.eq.s32.totalorder %v393_v31, %v142_v23 }
 0x144   :  { %v201_v28 = vsel %vm19_vm0, %v117_v24, 0.0  ;;  %v111_v29 = vmax.f32 %v103_v25, 1e-07  ;;  %vm158_vm2 = vcmp.eq.s32.totalorder %v393_v31, %v136_v37  ;;  %v167_v45 = vsel %vm159_vm1, %v117_v24, 0.0 }
 0x145   :  { %v281_v30 = vpop.eup %280  ;;  %202 = vadd.xlane.f32.xlu1 %v201_v28  ;;  %v204_v32 = vsel %vm19_vm0, %v118_v26, 0.0  ;;  %v112_v33 = vmax.f32 %v104_v27, 1e-07  ;;  %v177_v48 = vsel %vm19_vm0, %v167_v45, 0.0  ;;  %v166_v49 = vsel %vm158_vm2, %v116_v14, 0.0 }
 0x146   :  { %205 = vadd.xlane.f32.xlu0 %v204_v32  ;;  %v145_v34 = vpop.permute.xlu1 %144  ;;  %v119_v35 = vmin.f32 %v111_v29, 1.0  ;;  %v105_v36 = vmul.f32 %v281_v30, %v349_v47  ;;  %v283_v41 = vpop.eup %282  ;;  %v168_v52 = vsel %vm160_vm3, %v118_v26, 0.0  ;;  %v174_v53 = vsel %vm19_vm0, %v166_v49, 0.0 }
 0x147   :  { %v120_v38 = vmin.f32 %v112_v33, 1.0  ;;  %v106_v47 = vmul.f32 %v283_v41, %v355_v50  ;;  %vm161_vm4 = vcmp.eq.s32.totalorder %v393_v31, %v145_v34  ;;  %v180_v55 = vsel %vm19_vm0, %v168_v52, 0.0 }
 0x148   :  { %v207_v39 = vsel %vm19_vm0, %v119_v35, 0.0  ;;  %v113_v40 = vmax.f32 %v105_v36, 1e-07  ;;  %v169_v56 = vsel %vm161_vm4, %v119_v35, 0.0 }
 0x149   :  { %208 = vadd.xlane.f32.xlu1 %v207_v39  ;;  %v210_v42 = vsel %vm19_vm0, %v120_v38, 0.0  ;;  %v114_v54 = vmax.f32 %v106_v47, 1e-07  ;;  %v183_v58 = vsel %vm19_vm0, %v169_v56, 0.0 }
 0x14a   :  { %211 = vadd.xlane.f32.xlu0 %v210_v42  ;;  %v148_v43 = vpop.permute.xlu1 %147  ;;  %v121_v44 = vmin.f32 %v113_v40, 1.0 }
 0x14b   :  { %vm162_vm5 = vcmp.eq.s32.totalorder %v393_v31, %v148_v43  ;;  %v122_v59 = vmin.f32 %v114_v54, 1.0 }
 0x14c   :  { %v213_v46 = vsel %vm19_vm0, %v121_v44, 0.0  ;;  %v170_v57 = vsel %vm162_vm5, %v120_v38, 0.0 }
 0x14d   :  { %214 = vadd.xlane.f32.xlu1 %v213_v46  ;;  %v186_v60 = vsel %vm19_vm0, %v170_v57, 0.0  ;;  %v216_v2 = vsel %vm19_vm0, %v122_v59, 0.0 }
 0x14e   :  { %178 = vadd.xlane.f32.xlu0 %v177_v48  ;;  %v151_v51 = vpop.permute.xlu1 %150 }
 0x14f   :  { %vm163_vm6 = vcmp.eq.s32.totalorder %v393_v31, %v151_v51 }
 0x150   :  { %v171_v61 = vsel %vm163_vm6, %v121_v44, 0.0 }
 0x151   :  { %175 = vadd.xlane.f32.xlu1 %v174_v53  ;;  %v189_v0 = vsel %vm19_vm0, %v171_v61, 0.0 }
 0x152   :  { %181 = vadd.xlane.f32.xlu0 %v180_v55  ;;  %v154_v50 = vpop.permute.xlu1 %153 }
 0x153   :  { %vm164_vm7 = vcmp.eq.s32.totalorder %v393_v31, %v154_v50 }
 0x154   :  { %v172_v63 = vsel %vm164_vm7, %v122_v59, 0.0 }
 0x155   :  { %184 = vadd.xlane.f32.xlu1 %v183_v58  ;;  %v192_v1 = vsel %vm19_vm0, %v172_v63, 0.0 }
 0x156   :  { %187 = vadd.xlane.f32.xlu0 %v186_v60 }
 0x159   :  { %190 = vadd.xlane.f32.xlu1 %v189_v0 }
 0x15a   :  { %193 = vadd.xlane.f32.xlu0 %v192_v1 }
 0x15e   :  { %217 = vadd.xlane.f32.xlu0 %v216_v2 }
 0x183   :  { %v91_v3 = vpop.xlane.xlu1 %90 }
 0x184   :  { %284 = vrcp.f32 %v91_v3 }
 0x187   :  { %v157_v6 = vpop.permute.xlu1 %156 }
 0x188   :  { %vm165_vm8 = vcmp.eq.s32.totalorder %v393_v31, %v157_v6 }
 0x18e   :  { %v285_v4 = vpop.eup %284 }
 0x18f   :  { %v107_v5 = vmul.f32 %v285_v4, %v381_v62 }
 0x191   :  { %v115_v7 = vmax.f32 %v107_v5, 1e-07 }
 0x193   :  { %v123_v8 = vmin.f32 %v115_v7, 1.0 }
 0x195   :  { %v173_v9 = vsel %vm165_vm8, %v123_v8, 0.0  ;;  %v219_v11 = vsel %vm19_vm0, %v123_v8, 0.0 }
 0x196   :  { %v195_v10 = vsel %vm19_vm0, %v173_v9, 0.0 }
 0x197   :  { %196 = vadd.xlane.f32.xlu1 %v195_v10 }
 0x19b   :  { %220 = vadd.xlane.f32.xlu1 %v219_v11 }
 0x1ce   :  { %v200_v12 = vpop.xlane.xlu0 %199 }
 0x1d2   :  { %v203_v13 = vpop.xlane.xlu1 %202 }
 0x1d3   :  { %v206_v14 = vpop.xlane.xlu0 %205 }
 0x1d6   :  { %v209_v15 = vpop.xlane.xlu1 %208 }
 0x1d7   :  { %v212_v16 = vpop.xlane.xlu0 %211 }
 0x1da   :  { %v215_v17 = vpop.xlane.xlu1 %214 }
 0x1db   :  { %v179_v18 = vpop.xlane.xlu0 %178 }
 0x1dc   :  { %v223_v62 = vsub.f32 %v203_v13, %v179_v18 }
 0x1de   :  { %v231_v19 = vmul.f32 9.2103405, %v223_v62  ;;  %v176_v20 = vpop.xlane.xlu1 %175 }
 0x1df   :  { %v222_v21 = vsub.f32 %v200_v12, %v176_v20  ;;  %v182_v22 = vpop.xlane.xlu0 %181 }
 0x1e0   :  { %240 = vst.msk [vmem:[%s454_s2 + $0x8] sm:$0xff] %vm238_vm9, %v231_v19  ;;  %v224_v23 = vsub.f32 %v206_v14, %v182_v22 }
 0x1e1   :  { %v230_v24 = vmul.f32 9.2103405, %v222_v21 }
 0x1e2   :  { %v232_v25 = vmul.f32 9.2103405, %v224_v23  ;;  %v185_v26 = vpop.xlane.xlu1 %184 }
 0x1e3   :  { %239 = vst.msk [vmem:[%s454_s2] sm:$0xff] %vm238_vm9, %v230_v24  ;;  %v225_v27 = vsub.f32 %v209_v15, %v185_v26  ;;  %v188_v28 = vpop.xlane.xlu0 %187 }
 0x1e4   :  { %241 = vst.msk [vmem:[%s454_s2 + $0x10] sm:$0xff] %vm238_vm9, %v232_v25  ;;  %v226_v29 = vsub.f32 %v212_v16, %v188_v28 }
 0x1e5   :  { %v233_v30 = vmul.f32 9.2103405, %v225_v27 }
 0x1e6   :  { %v234_v31 = vmul.f32 9.2103405, %v226_v29  ;;  %v191_v32 = vpop.xlane.xlu1 %190 }
 0x1e7   :  { %242 = vst.msk [vmem:[%s454_s2 + $0x18] sm:$0xff] %vm238_vm9, %v233_v30  ;;  %v227_v33 = vsub.f32 %v215_v17, %v191_v32  ;;  %v194_v34 = vpop.xlane.xlu0 %193 }
 0x1e8   :  { %243 = vst.msk [vmem:[%s454_s2 + $0x20] sm:$0xff] %vm238_vm9, %v234_v31 }
 0x1e9   :  { %v235_v35 = vmul.f32 9.2103405, %v227_v33 }
 0x1eb   :  { %244 = vst.msk [vmem:[%s454_s2 + $0x28] sm:$0xff] %vm238_vm9, %v235_v35  ;;  %v218_v36 = vpop.xlane.xlu0 %217 }
 0x1ec   :  { %v228_v37 = vsub.f32 %v218_v36, %v194_v34 }
 0x1ee   :  { %v236_v38 = vmul.f32 9.2103405, %v228_v37 }
 0x1f0   :  { %245 = vst.msk [vmem:[%s454_s2 + $0x30] sm:$0xff] %vm238_vm9, %v236_v38 }
 0x224   :  { %v197_v39 = vpop.xlane.xlu1 %196 }
 0x228   :  { %v221_v40 = vpop.xlane.xlu1 %220 }
 0x229   :  { %v229_v41 = vsub.f32 %v221_v40, %v197_v39 }
 0x22b   :  { %v237_v42 = vmul.f32 9.2103405, %v229_v41 }
 0x22d   :  { %246 = vst.msk [vmem:[%s454_s2 + $0x38] sm:$0xff] %vm238_vm9, %v237_v42 }

</bundles_post_ra>
